<compile_context>
chip_gen: v5e
topology: v5e:2x2
jax: 0.10.0
libtpu: 0.0.40
codegen_flags: <defaults>
</compile_context>

<pallas_src>
import functools

import jax
import jax.numpy as jnp
from jax.experimental import pallas as pl
from jax.experimental.pallas import tpu as pltpu


# ----------------------------- fused Pallas kernel ---------------------------

def _layernorm(y, gamma, beta, eps):
    mu = jnp.mean(y, axis=-1, keepdims=True)
    var = jnp.mean((y - mu) ** 2, axis=-1, keepdims=True)
    return (y - mu) * jax.lax.rsqrt(var + eps) * gamma + beta


def _transformer_block_kernel(
        x_ref, mask_ref,
        wq_ref, bq_ref, wk_ref, bk_ref, wv_ref, bv_ref,
        wo_ref, bo_ref, ln1g_ref, ln1b_ref,
        wi_ref, bi_ref, wo2_ref, bo2_ref, ln2g_ref, ln2b_ref,
        o_ref, *, num_heads, head_dim, eps):
    """One grid step == one batch element; the whole encoder block is fused."""
    x = x_ref[...]                     # [S, H]
    mask = mask_ref[...]               # [1, S] additive key mask (broadcast over queries)
    scale = 1.0 / (head_dim ** 0.5)

    # --- QKV projections; fold 1/sqrt(dh) into q ---
    q = (jnp.dot(x, wq_ref[...], preferred_element_type=jnp.float32) + bq_ref[...]) * scale
    k = jnp.dot(x, wk_ref[...], preferred_element_type=jnp.float32) + bk_ref[...]
    v = jnp.dot(x, wv_ref[...], preferred_element_type=jnp.float32) + bv_ref[...]

    # --- multi-head attention: per-head context goes straight through W_o ---
    wo = wo_ref[...]
    attn_dense = jnp.zeros_like(x) + bo_ref[...]          # [S, H], starts at bias
    for h in range(num_heads):                            # static unroll (nh small)
        lo = h * head_dim
        hi = lo + head_dim
        qh = q[:, lo:hi]                                   # [S, dh]
        kh = k[:, lo:hi]
        vh = v[:, lo:hi]
        s = jnp.dot(qh, kh.T, preferred_element_type=jnp.float32) + mask   # [S, S]
        s = s - jnp.max(s, axis=-1, keepdims=True)
        p = jnp.exp(s)
        p = p * pl.reciprocal(jnp.sum(p, axis=-1, keepdims=True), approx=False)
        # TODO(synk): attention-probs dropout omitted (eval mode / p=0).
        ctx_h = jnp.dot(p, vh, preferred_element_type=jnp.float32)          # [S, dh]
        attn_dense = attn_dense + jnp.dot(
            ctx_h, wo[lo:hi, :], preferred_element_type=jnp.float32)        # [S, H]

    # --- self output: dense (+dropout=identity) + LayerNorm(residual) ---
    attn_out = _layernorm(attn_dense + x, ln1g_ref[...], ln1b_ref[...], eps)

    # --- intermediate: dense + exact (erf) gelu ---
    inter = jnp.dot(attn_out, wi_ref[...], preferred_element_type=jnp.float32) + bi_ref[...]
    inter = 0.5 * inter * (1.0 + jax.lax.erf(inter * 0.7071067811865476))

    # --- output: dense (+dropout=identity) + LayerNorm(residual) ---
    out_dense = jnp.dot(inter, wo2_ref[...], preferred_element_type=jnp.float32) + bo2_ref[...]
    out = _layernorm(out_dense + attn_out, ln2g_ref[...], ln2b_ref[...], eps)

    o_ref[...] = out.astype(o_ref.dtype)


def transformer_forward(params, hidden_states, attention_mask, num_heads, eps=1e-12):
    """hidden_states: [B, S, H]; attention_mask: additive [B, 1, 1, S]."""
    B, S, H = hidden_states.shape
    I = params["wi"].shape[1]
    dh = H // num_heads
    mask = attention_mask.reshape(B, 1, S)   # [B, 1, S] additive

    def rep(shape):
        # weight / bias / LN param: full-array block, constant index_map so the
        # tile stays VMEM-resident (no re-DMA) across grid steps.
        return pl.BlockSpec(shape, lambda b: (0,) * len(shape))

    in_specs = [
        pl.BlockSpec((None, S, H), lambda b: (b, 0, 0)),   # hidden_states  -> [S, H]
        pl.BlockSpec((None, 1, S), lambda b: (b, 0, 0)),   # additive mask  -> [1, S]
        rep((H, H)), rep((1, H)),    # wq, bq
        rep((H, H)), rep((1, H)),    # wk, bk
        rep((H, H)), rep((1, H)),    # wv, bv
        rep((H, H)), rep((1, H)),    # wo, bo
        rep((1, H)), rep((1, H)),    # ln1 gamma, beta
        rep((H, I)), rep((1, I)),    # wi, bi
        rep((I, H)), rep((1, H)),    # wo2, bo2
        rep((1, H)), rep((1, H)),    # ln2 gamma, beta
    ]

    kernel = functools.partial(
        _transformer_block_kernel, num_heads=num_heads, head_dim=dh, eps=eps)

    return pl.pallas_call(
        kernel,
        out_shape=jax.ShapeDtypeStruct((B, S, H), jnp.float32),
        grid=(B,),
        in_specs=in_specs,
        out_specs=pl.BlockSpec((None, S, H), lambda b: (b, 0, 0)),
        compiler_params=pltpu.CompilerParams(
            dimension_semantics=("parallel",)),
    )(hidden_states, mask,
      params["wq"], params["bq"].reshape(1, H),
      params["wk"], params["bk"].reshape(1, H),
      params["wv"], params["bv"].reshape(1, H),
      params["wo"], params["bo"].reshape(1, H),
      params["ln1_g"].reshape(1, H), params["ln1_b"].reshape(1, H),
      params["wi"], params["bi"].reshape(1, I),
      params["wo2"], params["bo2"].reshape(1, H),
      params["ln2_g"].reshape(1, H), params["ln2_b"].reshape(1, H))


# ----------------------------- pure-JAX reference ---------------------------

def reference_forward(params, hidden_states, attention_mask, num_heads):
    B, S, H = hidden_states.shape
    dh = H // num_heads
    x = hidden_states.reshape(B * S, H)

    def lin(t, w, b):
        return t @ w + b

    q = lin(x, params["wq"], params["bq"]).reshape(B, S, num_heads, dh).transpose(0, 2, 1, 3)
    k = lin(x, params["wk"], params["bk"]).reshape(B, S, num_heads, dh).transpose(0, 2, 1, 3)
    v = lin(x, params["wv"], params["bv"]).reshape(B, S, num_heads, dh).transpose(0, 2, 1, 3)
    s = jnp.einsum("bhqd,bhkd->bhqk", q, k) / (dh ** 0.5) + attention_mask
    p = jax.nn.softmax(s, axis=-1)
    ctx = jnp.einsum("bhqk,bhkd->bhqd", p, v).transpose(0, 2, 1, 3).reshape(B * S, H)

    def ln(t, g, b, eps=1e-12):
        mu = t.mean(-1, keepdims=True)
        var = ((t - mu) ** 2).mean(-1, keepdims=True)
        return (t - mu) / jnp.sqrt(var + eps) * g + b

    a = ln(lin(ctx, params["wo"], params["bo"]) + x, params["ln1_g"], params["ln1_b"])
    i = lin(a, params["wi"], params["bi"])
    i = 0.5 * i * (1.0 + jax.lax.erf(i * 0.7071067811865476))
    o = ln(lin(i, params["wo2"], params["bo2"]) + a, params["ln2_g"], params["ln2_b"])
    return o.reshape(B, S, H)


# ----------------------------------- main -----------------------------------

if __name__ == "__main__":
    # cfg: HIDDEN_SIZE=32, NUM_ATTENTION_HEADS=4, INTERMEDIATE_SIZE=64,
    #      HIDDEN_ACT=gelu, HIDDEN_DROPOUT_PROB=0.0 (eval)
    B, S, H, NH, I = 2, 8, 32, 4, 64

    key = jax.random.PRNGKey(0)
    ks = jax.random.split(key, 12)
    init = lambda k, shape: (0.02 * jax.random.normal(k, shape)).astype(jnp.float32)

    params = dict(
        wq=init(ks[0], (H, H)), bq=jnp.zeros((H,), jnp.float32),
        wk=init(ks[1], (H, H)), bk=jnp.zeros((H,), jnp.float32),
        wv=init(ks[2], (H, H)), bv=jnp.zeros((H,), jnp.float32),
        wo=init(ks[3], (H, H)), bo=jnp.zeros((H,), jnp.float32),
        ln1_g=jnp.ones((H,), jnp.float32), ln1_b=jnp.zeros((H,), jnp.float32),
        wi=init(ks[4], (H, I)), bi=jnp.zeros((I,), jnp.float32),
        wo2=init(ks[5], (I, H)), bo2=jnp.zeros((H,), jnp.float32),
        ln2_g=jnp.ones((H,), jnp.float32), ln2_b=jnp.zeros((H,), jnp.float32),
    )

    hidden_states = jax.random.normal(ks[6], (B, S, H), jnp.float32)
    # binary key mask -> additive mask [B, 1, 1, S] (0 attend, -10000 masked)
    key_mask = jnp.ones((B, S), jnp.float32).at[1, S - 2:].set(0.0)
    attention_mask = ((1.0 - key_mask) * -10000.0).reshape(B, 1, 1, S)

    out = transformer_forward(params, hidden_states, attention_mask, NH)
    out = jax.block_until_ready(out)

    ref = reference_forward(params, hidden_states, attention_mask, NH)
    assert out.shape == (B, S, H)
    assert jnp.allclose(out, ref, atol=1e-4, rtol=1e-4), "mismatch vs reference"

    print("KERNEL_OK")
</pallas_src>

<mosaic_0001>
module attributes {stable_mosaic.version = 11 : i64} {
  func.func @_transformer_block_kernel(%arg0: i32, %arg1: memref<1x8x32xf32, #tpu.memory_space<vmem>>, %arg2: memref<1x1x8xf32, #tpu.memory_space<vmem>>, %arg3: memref<32x32xf32, #tpu.memory_space<vmem>>, %arg4: memref<1x32xf32, #tpu.memory_space<vmem>>, %arg5: memref<32x32xf32, #tpu.memory_space<vmem>>, %arg6: memref<1x32xf32, #tpu.memory_space<vmem>>, %arg7: memref<32x32xf32, #tpu.memory_space<vmem>>, %arg8: memref<1x32xf32, #tpu.memory_space<vmem>>, %arg9: memref<32x32xf32, #tpu.memory_space<vmem>>, %arg10: memref<1x32xf32, #tpu.memory_space<vmem>>, %arg11: memref<1x32xf32, #tpu.memory_space<vmem>>, %arg12: memref<1x32xf32, #tpu.memory_space<vmem>>, %arg13: memref<32x64xf32, #tpu.memory_space<vmem>>, %arg14: memref<1x64xf32, #tpu.memory_space<vmem>>, %arg15: memref<64x32xf32, #tpu.memory_space<vmem>>, %arg16: memref<1x32xf32, #tpu.memory_space<vmem>>, %arg17: memref<1x32xf32, #tpu.memory_space<vmem>>, %arg18: memref<1x32xf32, #tpu.memory_space<vmem>>, %arg19: memref<1x8x32xf32, #tpu.memory_space<vmem>>) attributes {dimension_semantics = [#tpu.dimension_semantics<parallel>], iteration_bounds = array<i64: 2>, scalar_prefetch = 0 : i64, scratch_operands = 0 : i64, tpu.core_type = #tpu.core_type<tc>, window_params = [{transform_indices = @transform_0, window_bounds = array<i64: 1, 8, 32>}, {transform_indices = @transform_1, window_bounds = array<i64: 1, 1, 8>}, {pipeline_mode = #tpu.pipeline_mode<synchronous>, transform_indices = @transform_2, window_bounds = array<i64: 32, 32>}, {pipeline_mode = #tpu.pipeline_mode<synchronous>, transform_indices = @transform_3, window_bounds = array<i64: 1, 32>}, {pipeline_mode = #tpu.pipeline_mode<synchronous>, transform_indices = @transform_4, window_bounds = array<i64: 32, 32>}, {pipeline_mode = #tpu.pipeline_mode<synchronous>, transform_indices = @transform_5, window_bounds = array<i64: 1, 32>}, {pipeline_mode = #tpu.pipeline_mode<synchronous>, transform_indices = @transform_6, window_bounds = array<i64: 32, 32>}, {pipeline_mode = #tpu.pipeline_mode<synchronous>, transform_indices = @transform_7, window_bounds = array<i64: 1, 32>}, {pipeline_mode = #tpu.pipeline_mode<synchronous>, transform_indices = @transform_8, window_bounds = array<i64: 32, 32>}, {pipeline_mode = #tpu.pipeline_mode<synchronous>, transform_indices = @transform_9, window_bounds = array<i64: 1, 32>}, {pipeline_mode = #tpu.pipeline_mode<synchronous>, transform_indices = @transform_10, window_bounds = array<i64: 1, 32>}, {pipeline_mode = #tpu.pipeline_mode<synchronous>, transform_indices = @transform_11, window_bounds = array<i64: 1, 32>}, {pipeline_mode = #tpu.pipeline_mode<synchronous>, transform_indices = @transform_12, window_bounds = array<i64: 32, 64>}, {pipeline_mode = #tpu.pipeline_mode<synchronous>, transform_indices = @transform_13, window_bounds = array<i64: 1, 64>}, {pipeline_mode = #tpu.pipeline_mode<synchronous>, transform_indices = @transform_14, window_bounds = array<i64: 64, 32>}, {pipeline_mode = #tpu.pipeline_mode<synchronous>, transform_indices = @transform_15, window_bounds = array<i64: 1, 32>}, {pipeline_mode = #tpu.pipeline_mode<synchronous>, transform_indices = @transform_16, window_bounds = array<i64: 1, 32>}, {pipeline_mode = #tpu.pipeline_mode<synchronous>, transform_indices = @transform_17, window_bounds = array<i64: 1, 32>}, {transform_indices = @transform_18, window_bounds = array<i64: 1, 8, 32>}]} {
    %c0 = arith.constant 0 : index
    %c0_0 = arith.constant 0 : index
    %c0_1 = arith.constant 0 : index
    %0 = vector.load %arg1[%c0, %c0_0, %c0_1] : memref<1x8x32xf32, #tpu.memory_space<vmem>>, vector<1x8x32xf32>
    %1 = vector.shape_cast %0 : vector<1x8x32xf32> to vector<8x32xf32>
    %c0_2 = arith.constant 0 : index
    %c0_3 = arith.constant 0 : index
    %c0_4 = arith.constant 0 : index
    %2 = vector.load %arg2[%c0_2, %c0_3, %c0_4] : memref<1x1x8xf32, #tpu.memory_space<vmem>>, vector<1x1x8xf32>
    %3 = vector.shape_cast %2 : vector<1x1x8xf32> to vector<1x8xf32>
    %c0_5 = arith.constant 0 : index
    %c0_6 = arith.constant 0 : index
    %4 = vector.load %arg3[%c0_5, %c0_6] : memref<32x32xf32, #tpu.memory_space<vmem>>, vector<32x32xf32>
    %cst = arith.constant dense<0.000000e+00> : vector<8x32xf32>
    %5 = tpu.matmul %1, %4, %cst {dimension_numbers = #tpu.dot_dimension_numbers<[1], [0], [0], [1], [0, 0, 1, 1], [], []>} : vector<8x32xf32>, vector<32x32xf32>, vector<8x32xf32> -> vector<8x32xf32>
    %c0_7 = arith.constant 0 : index
    %c0_8 = arith.constant 0 : index
    %6 = vector.load %arg4[%c0_7, %c0_8] : memref<1x32xf32, #tpu.memory_space<vmem>>, vector<1x32xf32>
    %7 = vector.broadcast %6 : vector<1x32xf32> to vector<8x32xf32>
    %8 = arith.addf %5, %7 : vector<8x32xf32>
    %cst_9 = arith.constant 0.353553385 : f32
    %9 = vector.broadcast %cst_9 : f32 to vector<8x32xf32>
    %10 = arith.mulf %8, %9 : vector<8x32xf32>
    %c0_10 = arith.constant 0 : index
    %c0_11 = arith.constant 0 : index
    %11 = vector.load %arg5[%c0_10, %c0_11] : memref<32x32xf32, #tpu.memory_space<vmem>>, vector<32x32xf32>
    %cst_12 = arith.constant dense<0.000000e+00> : vector<8x32xf32>
    %12 = tpu.matmul %1, %11, %cst_12 {dimension_numbers = #tpu.dot_dimension_numbers<[1], [0], [0], [1], [0, 0, 1, 1], [], []>} : vector<8x32xf32>, vector<32x32xf32>, vector<8x32xf32> -> vector<8x32xf32>
    %c0_13 = arith.constant 0 : index
    %c0_14 = arith.constant 0 : index
    %13 = vector.load %arg6[%c0_13, %c0_14] : memref<1x32xf32, #tpu.memory_space<vmem>>, vector<1x32xf32>
    %14 = vector.broadcast %13 : vector<1x32xf32> to vector<8x32xf32>
    %15 = arith.addf %12, %14 : vector<8x32xf32>
    %c0_15 = arith.constant 0 : index
    %c0_16 = arith.constant 0 : index
    %16 = vector.load %arg7[%c0_15, %c0_16] : memref<32x32xf32, #tpu.memory_space<vmem>>, vector<32x32xf32>
    %cst_17 = arith.constant dense<0.000000e+00> : vector<8x32xf32>
    %17 = tpu.matmul %1, %16, %cst_17 {dimension_numbers = #tpu.dot_dimension_numbers<[1], [0], [0], [1], [0, 0, 1, 1], [], []>} : vector<8x32xf32>, vector<32x32xf32>, vector<8x32xf32> -> vector<8x32xf32>
    %c0_18 = arith.constant 0 : index
    %c0_19 = arith.constant 0 : index
    %18 = vector.load %arg8[%c0_18, %c0_19] : memref<1x32xf32, #tpu.memory_space<vmem>>, vector<1x32xf32>
    %19 = vector.broadcast %18 : vector<1x32xf32> to vector<8x32xf32>
    %20 = arith.addf %17, %19 : vector<8x32xf32>
    %c0_20 = arith.constant 0 : index
    %c0_21 = arith.constant 0 : index
    %21 = vector.load %arg9[%c0_20, %c0_21] : memref<32x32xf32, #tpu.memory_space<vmem>>, vector<32x32xf32>
    %cst_22 = arith.constant 0.000000e+00 : f32
    %22 = vector.broadcast %cst_22 : f32 to vector<8x32xf32>
    %c0_23 = arith.constant 0 : index
    %c0_24 = arith.constant 0 : index
    %23 = vector.load %arg10[%c0_23, %c0_24] : memref<1x32xf32, #tpu.memory_space<vmem>>, vector<1x32xf32>
    %24 = vector.broadcast %23 : vector<1x32xf32> to vector<8x32xf32>
    %25 = arith.addf %22, %24 : vector<8x32xf32>
    %26 = vector.extract_strided_slice %10 {offsets = [0, 0], sizes = [8, 8], strides = [1, 1]} : vector<8x32xf32> to vector<8x8xf32>
    %27 = vector.extract_strided_slice %15 {offsets = [0, 0], sizes = [8, 8], strides = [1, 1]} : vector<8x32xf32> to vector<8x8xf32>
    %28 = vector.extract_strided_slice %20 {offsets = [0, 0], sizes = [8, 8], strides = [1, 1]} : vector<8x32xf32> to vector<8x8xf32>
    %29 = tpu.transpose %27, [1, 0] : vector<8x8xf32> -> vector<8x8xf32>
    %cst_25 = arith.constant dense<0.000000e+00> : vector<8x8xf32>
    %30 = tpu.matmul %26, %29, %cst_25 {dimension_numbers = #tpu.dot_dimension_numbers<[1], [0], [0], [1], [0, 0, 1, 1], [], []>} : vector<8x8xf32>, vector<8x8xf32>, vector<8x8xf32> -> vector<8x8xf32>
    %31 = vector.broadcast %3 : vector<1x8xf32> to vector<8x8xf32>
    %32 = arith.addf %30, %31 : vector<8x8xf32>
    %cst_26 = arith.constant dense<0xFF800000> : vector<8xf32>
    %33 = vector.multi_reduction <maximumf>, %32, %cst_26 [1] : vector<8x8xf32> to vector<8xf32>
    %34 = vector.shape_cast %33 : vector<8xf32> to vector<8x1xf32>
    %35 = vector.broadcast %34 : vector<8x1xf32> to vector<8x8xf32>
    %36 = arith.subf %32, %35 : vector<8x8xf32>
    %37 = math.exp %36 : vector<8x8xf32>
    %cst_27 = arith.constant dense<0.000000e+00> : vector<8xf32>
    %38 = vector.multi_reduction <add>, %37, %cst_27 [1] : vector<8x8xf32> to vector<8xf32>
    %39 = vector.shape_cast %38 : vector<8xf32> to vector<8x1xf32>
    %40 = tpu.reciprocal %39 : vector<8x1xf32> -> vector<8x1xf32>
    %41 = vector.broadcast %40 : vector<8x1xf32> to vector<8x8xf32>
    %42 = arith.mulf %37, %41 : vector<8x8xf32>
    %cst_28 = arith.constant dense<0.000000e+00> : vector<8x8xf32>
    %43 = tpu.matmul %42, %28, %cst_28 {dimension_numbers = #tpu.dot_dimension_numbers<[1], [0], [0], [1], [0, 0, 1, 1], [], []>} : vector<8x8xf32>, vector<8x8xf32>, vector<8x8xf32> -> vector<8x8xf32>
    %44 = vector.extract_strided_slice %21 {offsets = [0, 0], sizes = [8, 32], strides = [1, 1]} : vector<32x32xf32> to vector<8x32xf32>
    %cst_29 = arith.constant dense<0.000000e+00> : vector<8x32xf32>
    %45 = tpu.matmul %43, %44, %cst_29 {dimension_numbers = #tpu.dot_dimension_numbers<[1], [0], [0], [1], [0, 0, 1, 1], [], []>} : vector<8x8xf32>, vector<8x32xf32>, vector<8x32xf32> -> vector<8x32xf32>
    %46 = arith.addf %25, %45 : vector<8x32xf32>
    %47 = vector.extract_strided_slice %10 {offsets = [0, 8], sizes = [8, 8], strides = [1, 1]} : vector<8x32xf32> to vector<8x8xf32>
    %48 = vector.extract_strided_slice %15 {offsets = [0, 8], sizes = [8, 8], strides = [1, 1]} : vector<8x32xf32> to vector<8x8xf32>
    %49 = vector.extract_strided_slice %20 {offsets = [0, 8], sizes = [8, 8], strides = [1, 1]} : vector<8x32xf32> to vector<8x8xf32>
    %50 = tpu.transpose %48, [1, 0] : vector<8x8xf32> -> vector<8x8xf32>
    %cst_30 = arith.constant dense<0.000000e+00> : vector<8x8xf32>
    %51 = tpu.matmul %47, %50, %cst_30 {dimension_numbers = #tpu.dot_dimension_numbers<[1], [0], [0], [1], [0, 0, 1, 1], [], []>} : vector<8x8xf32>, vector<8x8xf32>, vector<8x8xf32> -> vector<8x8xf32>
    %52 = vector.broadcast %3 : vector<1x8xf32> to vector<8x8xf32>
    %53 = arith.addf %51, %52 : vector<8x8xf32>
    %cst_31 = arith.constant dense<0xFF800000> : vector<8xf32>
    %54 = vector.multi_reduction <maximumf>, %53, %cst_31 [1] : vector<8x8xf32> to vector<8xf32>
    %55 = vector.shape_cast %54 : vector<8xf32> to vector<8x1xf32>
    %56 = vector.broadcast %55 : vector<8x1xf32> to vector<8x8xf32>
    %57 = arith.subf %53, %56 : vector<8x8xf32>
    %58 = math.exp %57 : vector<8x8xf32>
    %cst_32 = arith.constant dense<0.000000e+00> : vector<8xf32>
    %59 = vector.multi_reduction <add>, %58, %cst_32 [1] : vector<8x8xf32> to vector<8xf32>
    %60 = vector.shape_cast %59 : vector<8xf32> to vector<8x1xf32>
    %61 = tpu.reciprocal %60 : vector<8x1xf32> -> vector<8x1xf32>
    %62 = vector.broadcast %61 : vector<8x1xf32> to vector<8x8xf32>
    %63 = arith.mulf %58, %62 : vector<8x8xf32>
    %cst_33 = arith.constant dense<0.000000e+00> : vector<8x8xf32>
    %64 = tpu.matmul %63, %49, %cst_33 {dimension_numbers = #tpu.dot_dimension_numbers<[1], [0], [0], [1], [0, 0, 1, 1], [], []>} : vector<8x8xf32>, vector<8x8xf32>, vector<8x8xf32> -> vector<8x8xf32>
    %65 = vector.extract_strided_slice %21 {offsets = [8, 0], sizes = [8, 32], strides = [1, 1]} : vector<32x32xf32> to vector<8x32xf32>
    %cst_34 = arith.constant dense<0.000000e+00> : vector<8x32xf32>
    %66 = tpu.matmul %64, %65, %cst_34 {dimension_numbers = #tpu.dot_dimension_numbers<[1], [0], [0], [1], [0, 0, 1, 1], [], []>} : vector<8x8xf32>, vector<8x32xf32>, vector<8x32xf32> -> vector<8x32xf32>
    %67 = arith.addf %46, %66 : vector<8x32xf32>
    %68 = vector.extract_strided_slice %10 {offsets = [0, 16], sizes = [8, 8], strides = [1, 1]} : vector<8x32xf32> to vector<8x8xf32>
    %69 = vector.extract_strided_slice %15 {offsets = [0, 16], sizes = [8, 8], strides = [1, 1]} : vector<8x32xf32> to vector<8x8xf32>
    %70 = vector.extract_strided_slice %20 {offsets = [0, 16], sizes = [8, 8], strides = [1, 1]} : vector<8x32xf32> to vector<8x8xf32>
    %71 = tpu.transpose %69, [1, 0] : vector<8x8xf32> -> vector<8x8xf32>
    %cst_35 = arith.constant dense<0.000000e+00> : vector<8x8xf32>
    %72 = tpu.matmul %68, %71, %cst_35 {dimension_numbers = #tpu.dot_dimension_numbers<[1], [0], [0], [1], [0, 0, 1, 1], [], []>} : vector<8x8xf32>, vector<8x8xf32>, vector<8x8xf32> -> vector<8x8xf32>
    %73 = vector.broadcast %3 : vector<1x8xf32> to vector<8x8xf32>
    %74 = arith.addf %72, %73 : vector<8x8xf32>
    %cst_36 = arith.constant dense<0xFF800000> : vector<8xf32>
    %75 = vector.multi_reduction <maximumf>, %74, %cst_36 [1] : vector<8x8xf32> to vector<8xf32>
    %76 = vector.shape_cast %75 : vector<8xf32> to vector<8x1xf32>
    %77 = vector.broadcast %76 : vector<8x1xf32> to vector<8x8xf32>
    %78 = arith.subf %74, %77 : vector<8x8xf32>
    %79 = math.exp %78 : vector<8x8xf32>
    %cst_37 = arith.constant dense<0.000000e+00> : vector<8xf32>
    %80 = vector.multi_reduction <add>, %79, %cst_37 [1] : vector<8x8xf32> to vector<8xf32>
    %81 = vector.shape_cast %80 : vector<8xf32> to vector<8x1xf32>
    %82 = tpu.reciprocal %81 : vector<8x1xf32> -> vector<8x1xf32>
    %83 = vector.broadcast %82 : vector<8x1xf32> to vector<8x8xf32>
    %84 = arith.mulf %79, %83 : vector<8x8xf32>
    %cst_38 = arith.constant dense<0.000000e+00> : vector<8x8xf32>
    %85 = tpu.matmul %84, %70, %cst_38 {dimension_numbers = #tpu.dot_dimension_numbers<[1], [0], [0], [1], [0, 0, 1, 1], [], []>} : vector<8x8xf32>, vector<8x8xf32>, vector<8x8xf32> -> vector<8x8xf32>
    %86 = vector.extract_strided_slice %21 {offsets = [16, 0], sizes = [8, 32], strides = [1, 1]} : vector<32x32xf32> to vector<8x32xf32>
    %cst_39 = arith.constant dense<0.000000e+00> : vector<8x32xf32>
    %87 = tpu.matmul %85, %86, %cst_39 {dimension_numbers = #tpu.dot_dimension_numbers<[1], [0], [0], [1], [0, 0, 1, 1], [], []>} : vector<8x8xf32>, vector<8x32xf32>, vector<8x32xf32> -> vector<8x32xf32>
    %88 = arith.addf %67, %87 : vector<8x32xf32>
    %89 = vector.extract_strided_slice %10 {offsets = [0, 24], sizes = [8, 8], strides = [1, 1]} : vector<8x32xf32> to vector<8x8xf32>
    %90 = vector.extract_strided_slice %15 {offsets = [0, 24], sizes = [8, 8], strides = [1, 1]} : vector<8x32xf32> to vector<8x8xf32>
    %91 = vector.extract_strided_slice %20 {offsets = [0, 24], sizes = [8, 8], strides = [1, 1]} : vector<8x32xf32> to vector<8x8xf32>
    %92 = tpu.transpose %90, [1, 0] : vector<8x8xf32> -> vector<8x8xf32>
    %cst_40 = arith.constant dense<0.000000e+00> : vector<8x8xf32>
    %93 = tpu.matmul %89, %92, %cst_40 {dimension_numbers = #tpu.dot_dimension_numbers<[1], [0], [0], [1], [0, 0, 1, 1], [], []>} : vector<8x8xf32>, vector<8x8xf32>, vector<8x8xf32> -> vector<8x8xf32>
    %94 = vector.broadcast %3 : vector<1x8xf32> to vector<8x8xf32>
    %95 = arith.addf %93, %94 : vector<8x8xf32>
    %cst_41 = arith.constant dense<0xFF800000> : vector<8xf32>
    %96 = vector.multi_reduction <maximumf>, %95, %cst_41 [1] : vector<8x8xf32> to vector<8xf32>
    %97 = vector.shape_cast %96 : vector<8xf32> to vector<8x1xf32>
    %98 = vector.broadcast %97 : vector<8x1xf32> to vector<8x8xf32>
    %99 = arith.subf %95, %98 : vector<8x8xf32>
    %100 = math.exp %99 : vector<8x8xf32>
    %cst_42 = arith.constant dense<0.000000e+00> : vector<8xf32>
    %101 = vector.multi_reduction <add>, %100, %cst_42 [1] : vector<8x8xf32> to vector<8xf32>
    %102 = vector.shape_cast %101 : vector<8xf32> to vector<8x1xf32>
    %103 = tpu.reciprocal %102 : vector<8x1xf32> -> vector<8x1xf32>
    %104 = vector.broadcast %103 : vector<8x1xf32> to vector<8x8xf32>
    %105 = arith.mulf %100, %104 : vector<8x8xf32>
    %cst_43 = arith.constant dense<0.000000e+00> : vector<8x8xf32>
    %106 = tpu.matmul %105, %91, %cst_43 {dimension_numbers = #tpu.dot_dimension_numbers<[1], [0], [0], [1], [0, 0, 1, 1], [], []>} : vector<8x8xf32>, vector<8x8xf32>, vector<8x8xf32> -> vector<8x8xf32>
    %107 = vector.extract_strided_slice %21 {offsets = [24, 0], sizes = [8, 32], strides = [1, 1]} : vector<32x32xf32> to vector<8x32xf32>
    %cst_44 = arith.constant dense<0.000000e+00> : vector<8x32xf32>
    %108 = tpu.matmul %106, %107, %cst_44 {dimension_numbers = #tpu.dot_dimension_numbers<[1], [0], [0], [1], [0, 0, 1, 1], [], []>} : vector<8x8xf32>, vector<8x32xf32>, vector<8x32xf32> -> vector<8x32xf32>
    %109 = arith.addf %88, %108 : vector<8x32xf32>
    %110 = arith.addf %109, %1 : vector<8x32xf32>
    %c0_45 = arith.constant 0 : index
    %c0_46 = arith.constant 0 : index
    %111 = vector.load %arg11[%c0_45, %c0_46] : memref<1x32xf32, #tpu.memory_space<vmem>>, vector<1x32xf32>
    %c0_47 = arith.constant 0 : index
    %c0_48 = arith.constant 0 : index
    %112 = vector.load %arg12[%c0_47, %c0_48] : memref<1x32xf32, #tpu.memory_space<vmem>>, vector<1x32xf32>
    %cst_49 = arith.constant dense<0.000000e+00> : vector<8xf32>
    %113 = vector.multi_reduction <add>, %110, %cst_49 [1] : vector<8x32xf32> to vector<8xf32>
    %114 = vector.shape_cast %113 : vector<8xf32> to vector<8x1xf32>
    %cst_50 = arith.constant 3.200000e+01 : f32
    %115 = vector.broadcast %cst_50 : f32 to vector<8x1xf32>
    %116 = arith.divf %114, %115 : vector<8x1xf32>
    %117 = vector.broadcast %116 : vector<8x1xf32> to vector<8x32xf32>
    %118 = arith.subf %110, %117 : vector<8x32xf32>
    %119 = arith.mulf %118, %118 : vector<8x32xf32>
    %cst_51 = arith.constant dense<0.000000e+00> : vector<8xf32>
    %120 = vector.multi_reduction <add>, %119, %cst_51 [1] : vector<8x32xf32> to vector<8xf32>
    %121 = vector.shape_cast %120 : vector<8xf32> to vector<8x1xf32>
    %cst_52 = arith.constant 3.200000e+01 : f32
    %122 = vector.broadcast %cst_52 : f32 to vector<8x1xf32>
    %123 = arith.divf %121, %122 : vector<8x1xf32>
    %124 = vector.broadcast %116 : vector<8x1xf32> to vector<8x32xf32>
    %125 = arith.subf %110, %124 : vector<8x32xf32>
    %cst_53 = arith.constant 9.99999996E-13 : f32
    %126 = vector.broadcast %cst_53 : f32 to vector<8x1xf32>
    %127 = arith.addf %123, %126 : vector<8x1xf32>
    %128 = math.rsqrt %127 : vector<8x1xf32>
    %129 = vector.broadcast %128 : vector<8x1xf32> to vector<8x32xf32>
    %130 = arith.mulf %125, %129 : vector<8x32xf32>
    %131 = vector.broadcast %111 : vector<1x32xf32> to vector<8x32xf32>
    %132 = arith.mulf %130, %131 : vector<8x32xf32>
    %133 = vector.broadcast %112 : vector<1x32xf32> to vector<8x32xf32>
    %134 = arith.addf %132, %133 : vector<8x32xf32>
    %c0_54 = arith.constant 0 : index
    %c0_55 = arith.constant 0 : index
    %135 = vector.load %arg13[%c0_54, %c0_55] : memref<32x64xf32, #tpu.memory_space<vmem>>, vector<32x64xf32>
    %cst_56 = arith.constant dense<0.000000e+00> : vector<8x64xf32>
    %136 = tpu.matmul %134, %135, %cst_56 {dimension_numbers = #tpu.dot_dimension_numbers<[1], [0], [0], [1], [0, 0, 1, 1], [], []>} : vector<8x32xf32>, vector<32x64xf32>, vector<8x64xf32> -> vector<8x64xf32>
    %c0_57 = arith.constant 0 : index
    %c0_58 = arith.constant 0 : index
    %137 = vector.load %arg14[%c0_57, %c0_58] : memref<1x64xf32, #tpu.memory_space<vmem>>, vector<1x64xf32>
    %138 = vector.broadcast %137 : vector<1x64xf32> to vector<8x64xf32>
    %139 = arith.addf %136, %138 : vector<8x64xf32>
    %cst_59 = arith.constant 5.000000e-01 : f32
    %140 = vector.broadcast %cst_59 : f32 to vector<8x64xf32>
    %141 = arith.mulf %140, %139 : vector<8x64xf32>
    %cst_60 = arith.constant 0.707106769 : f32
    %142 = vector.broadcast %cst_60 : f32 to vector<8x64xf32>
    %143 = arith.mulf %139, %142 : vector<8x64xf32>
    %144 = math.erf %143 : vector<8x64xf32>
    %cst_61 = arith.constant 1.000000e+00 : f32
    %145 = vector.broadcast %cst_61 : f32 to vector<8x64xf32>
    %146 = arith.addf %145, %144 : vector<8x64xf32>
    %147 = arith.mulf %141, %146 : vector<8x64xf32>
    %c0_62 = arith.constant 0 : index
    %c0_63 = arith.constant 0 : index
    %148 = vector.load %arg15[%c0_62, %c0_63] : memref<64x32xf32, #tpu.memory_space<vmem>>, vector<64x32xf32>
    %cst_64 = arith.constant dense<0.000000e+00> : vector<8x32xf32>
    %149 = tpu.matmul %147, %148, %cst_64 {dimension_numbers = #tpu.dot_dimension_numbers<[1], [0], [0], [1], [0, 0, 1, 1], [], []>} : vector<8x64xf32>, vector<64x32xf32>, vector<8x32xf32> -> vector<8x32xf32>
    %c0_65 = arith.constant 0 : index
    %c0_66 = arith.constant 0 : index
    %150 = vector.load %arg16[%c0_65, %c0_66] : memref<1x32xf32, #tpu.memory_space<vmem>>, vector<1x32xf32>
    %151 = vector.broadcast %150 : vector<1x32xf32> to vector<8x32xf32>
    %152 = arith.addf %149, %151 : vector<8x32xf32>
    %153 = arith.addf %152, %134 : vector<8x32xf32>
    %c0_67 = arith.constant 0 : index
    %c0_68 = arith.constant 0 : index
    %154 = vector.load %arg17[%c0_67, %c0_68] : memref<1x32xf32, #tpu.memory_space<vmem>>, vector<1x32xf32>
    %c0_69 = arith.constant 0 : index
    %c0_70 = arith.constant 0 : index
    %155 = vector.load %arg18[%c0_69, %c0_70] : memref<1x32xf32, #tpu.memory_space<vmem>>, vector<1x32xf32>
    %cst_71 = arith.constant dense<0.000000e+00> : vector<8xf32>
    %156 = vector.multi_reduction <add>, %153, %cst_71 [1] : vector<8x32xf32> to vector<8xf32>
    %157 = vector.shape_cast %156 : vector<8xf32> to vector<8x1xf32>
    %cst_72 = arith.constant 3.200000e+01 : f32
    %158 = vector.broadcast %cst_72 : f32 to vector<8x1xf32>
    %159 = arith.divf %157, %158 : vector<8x1xf32>
    %160 = vector.broadcast %159 : vector<8x1xf32> to vector<8x32xf32>
    %161 = arith.subf %153, %160 : vector<8x32xf32>
    %162 = arith.mulf %161, %161 : vector<8x32xf32>
    %cst_73 = arith.constant dense<0.000000e+00> : vector<8xf32>
    %163 = vector.multi_reduction <add>, %162, %cst_73 [1] : vector<8x32xf32> to vector<8xf32>
    %164 = vector.shape_cast %163 : vector<8xf32> to vector<8x1xf32>
    %cst_74 = arith.constant 3.200000e+01 : f32
    %165 = vector.broadcast %cst_74 : f32 to vector<8x1xf32>
    %166 = arith.divf %164, %165 : vector<8x1xf32>
    %167 = vector.broadcast %159 : vector<8x1xf32> to vector<8x32xf32>
    %168 = arith.subf %153, %167 : vector<8x32xf32>
    %cst_75 = arith.constant 9.99999996E-13 : f32
    %169 = vector.broadcast %cst_75 : f32 to vector<8x1xf32>
    %170 = arith.addf %166, %169 : vector<8x1xf32>
    %171 = math.rsqrt %170 : vector<8x1xf32>
    %172 = vector.broadcast %171 : vector<8x1xf32> to vector<8x32xf32>
    %173 = arith.mulf %168, %172 : vector<8x32xf32>
    %174 = vector.broadcast %154 : vector<1x32xf32> to vector<8x32xf32>
    %175 = arith.mulf %173, %174 : vector<8x32xf32>
    %176 = vector.broadcast %155 : vector<1x32xf32> to vector<8x32xf32>
    %177 = arith.addf %175, %176 : vector<8x32xf32>
    %c0_76 = arith.constant 0 : index
    %c0_77 = arith.constant 0 : index
    %c0_78 = arith.constant 0 : index
    %178 = vector.load %arg19[%c0_76, %c0_77, %c0_78] : memref<1x8x32xf32, #tpu.memory_space<vmem>>, vector<1x8x32xf32>
    %179 = vector.shape_cast %178 : vector<1x8x32xf32> to vector<8x32xf32>
    %180 = vector.shape_cast %177 : vector<8x32xf32> to vector<1x8x32xf32>
    tpu.vector_store %arg19[%c0_76, %c0_77, %c0_78], %180 {strides = array<i32>} : memref<1x8x32xf32, #tpu.memory_space<vmem>>, vector<1x8x32xf32>,
    return
  }
  func.func @transform_0(%arg0: i32) -> (i32, i32, i32) {
    %c0_i32 = arith.constant 0 : i32
    %c0_i32_0 = arith.constant 0 : i32
    %c0_i32_1 = arith.constant 0 : i32
    return %arg0, %c0_i32, %c0_i32_0 : i32, i32, i32
  }
  func.func @transform_1(%arg0: i32) -> (i32, i32, i32) {
    %c0_i32 = arith.constant 0 : i32
    %c0_i32_0 = arith.constant 0 : i32
    %c0_i32_1 = arith.constant 0 : i32
    return %arg0, %c0_i32, %c0_i32_0 : i32, i32, i32
  }
  func.func @transform_2(%arg0: i32) -> (i32, i32) {
    %c0_i32 = arith.constant 0 : i32
    %c0_i32_0 = arith.constant 0 : i32
    %c0_i32_1 = arith.constant 0 : i32
    return %c0_i32, %c0_i32_0 : i32, i32
  }
  func.func @transform_3(%arg0: i32) -> (i32, i32) {
    %c0_i32 = arith.constant 0 : i32
    %c0_i32_0 = arith.constant 0 : i32
    %c0_i32_1 = arith.constant 0 : i32
    return %c0_i32, %c0_i32_0 : i32, i32
  }
  func.func @transform_4(%arg0: i32) -> (i32, i32) {
    %c0_i32 = arith.constant 0 : i32
    %c0_i32_0 = arith.constant 0 : i32
    %c0_i32_1 = arith.constant 0 : i32
    return %c0_i32, %c0_i32_0 : i32, i32
  }
  func.func @transform_5(%arg0: i32) -> (i32, i32) {
    %c0_i32 = arith.constant 0 : i32
    %c0_i32_0 = arith.constant 0 : i32
    %c0_i32_1 = arith.constant 0 : i32
    return %c0_i32, %c0_i32_0 : i32, i32
  }
  func.func @transform_6(%arg0: i32) -> (i32, i32) {
    %c0_i32 = arith.constant 0 : i32
    %c0_i32_0 = arith.constant 0 : i32
    %c0_i32_1 = arith.constant 0 : i32
    return %c0_i32, %c0_i32_0 : i32, i32
  }
  func.func @transform_7(%arg0: i32) -> (i32, i32) {
    %c0_i32 = arith.constant 0 : i32
    %c0_i32_0 = arith.constant 0 : i32
    %c0_i32_1 = arith.constant 0 : i32
    return %c0_i32, %c0_i32_0 : i32, i32
  }
  func.func @transform_8(%arg0: i32) -> (i32, i32) {
    %c0_i32 = arith.constant 0 : i32
    %c0_i32_0 = arith.constant 0 : i32
    %c0_i32_1 = arith.constant 0 : i32
    return %c0_i32, %c0_i32_0 : i32, i32
  }
  func.func @transform_9(%arg0: i32) -> (i32, i32) {
    %c0_i32 = arith.constant 0 : i32
    %c0_i32_0 = arith.constant 0 : i32
    %c0_i32_1 = arith.constant 0 : i32
    return %c0_i32, %c0_i32_0 : i32, i32
  }
  func.func @transform_10(%arg0: i32) -> (i32, i32) {
    %c0_i32 = arith.constant 0 : i32
    %c0_i32_0 = arith.constant 0 : i32
    %c0_i32_1 = arith.constant 0 : i32
    return %c0_i32, %c0_i32_0 : i32, i32
  }
  func.func @transform_11(%arg0: i32) -> (i32, i32) {
    %c0_i32 = arith.constant 0 : i32
    %c0_i32_0 = arith.constant 0 : i32
    %c0_i32_1 = arith.constant 0 : i32
    return %c0_i32, %c0_i32_0 : i32, i32
  }
  func.func @transform_12(%arg0: i32) -> (i32, i32) {
    %c0_i32 = arith.constant 0 : i32
    %c0_i32_0 = arith.constant 0 : i32
    %c0_i32_1 = arith.constant 0 : i32
    return %c0_i32, %c0_i32_0 : i32, i32
  }
  func.func @transform_13(%arg0: i32) -> (i32, i32) {
    %c0_i32 = arith.constant 0 : i32
    %c0_i32_0 = arith.constant 0 : i32
    %c0_i32_1 = arith.constant 0 : i32
    return %c0_i32, %c0_i32_0 : i32, i32
  }
  func.func @transform_14(%arg0: i32) -> (i32, i32) {
    %c0_i32 = arith.constant 0 : i32
    %c0_i32_0 = arith.constant 0 : i32
    %c0_i32_1 = arith.constant 0 : i32
    return %c0_i32, %c0_i32_0 : i32, i32
  }
  func.func @transform_15(%arg0: i32) -> (i32, i32) {
    %c0_i32 = arith.constant 0 : i32
    %c0_i32_0 = arith.constant 0 : i32
    %c0_i32_1 = arith.constant 0 : i32
    return %c0_i32, %c0_i32_0 : i32, i32
  }
  func.func @transform_16(%arg0: i32) -> (i32, i32) {
    %c0_i32 = arith.constant 0 : i32
    %c0_i32_0 = arith.constant 0 : i32
    %c0_i32_1 = arith.constant 0 : i32
    return %c0_i32, %c0_i32_0 : i32, i32
  }
  func.func @transform_17(%arg0: i32) -> (i32, i32) {
    %c0_i32 = arith.constant 0 : i32
    %c0_i32_0 = arith.constant 0 : i32
    %c0_i32_1 = arith.constant 0 : i32
    return %c0_i32, %c0_i32_0 : i32, i32
  }
  func.func @transform_18(%arg0: i32) -> (i32, i32, i32) {
    %c0_i32 = arith.constant 0 : i32
    %c0_i32_0 = arith.constant 0 : i32
    %c0_i32_1 = arith.constant 0 : i32
    return %arg0, %c0_i32, %c0_i32_0 : i32, i32, i32
  }
}

</mosaic_0001>

<bundles_post_ra>
// kernel: tpu_custom_call.1
= control target key start
LH: loop header
LB: loop body
LE: loop exit
PB: predicated region body
PF: predicated region fallthrough
CT: control target
= control target key end

     0   :  { %s2283_s0 = inlined_call_operand.hbm [shape: f32[2,8,32], index: 0, kind: input, shape index: {}]   ;;  %s2284_s1 = inlined_call_operand.hbm [shape: f32[2,1,8], index: 1, kind: input, shape index: {}]   ;;  %s2285_s2 = inlined_call_operand.vmem [shape: f32[32,32], index: 2, kind: input, shape index: {}]   ;;  %s2286_s3 = inlined_call_operand.vmem [shape: f32[1,32], index: 3, kind: input, shape index: {}]   ;;  %s2287_s4 = inlined_call_operand.vmem [shape: f32[32,32], index: 4, kind: input, shape index: {}]   ;;  %s2288_s5 = inlined_call_operand.vmem [shape: f32[1,32], index: 5, kind: input, shape index: {}]   ;;  %s2289_s6 = inlined_call_operand.vmem [shape: f32[32,32], index: 6, kind: input, shape index: {}]   ;;  %s2290_s7 = inlined_call_operand.vmem [shape: f32[1,32], index: 7, kind: input, shape index: {}]   ;;  %s2291_s8 = inlined_call_operand.hbm [shape: f32[32,32], index: 8, kind: input, shape index: {}]   ;;  %s2292_s9 = inlined_call_operand.vmem [shape: f32[1,32], index: 9, kind: input, shape index: {}]   ;;  %s2293_s10 = inlined_call_operand.vmem [shape: f32[1,32], index: 10, kind: input, shape index: {}]   ;;  %s2294_s11 = inlined_call_operand.vmem [shape: f32[1,32], index: 11, kind: input, shape index: {}]   ;;  %s2295_s12 = inlined_call_operand.hbm [shape: f32[32,64], index: 12, kind: input, shape index: {}]   ;;  %s2296_s13 = inlined_call_operand.vmem [shape: f32[1,64], index: 13, kind: input, shape index: {}]   ;;  %s2297_s14 = inlined_call_operand.vmem [shape: f32[64,32], index: 14, kind: input, shape index: {}]   ;;  %s2298_s15 = inlined_call_operand.vmem [shape: f32[1,32], index: 15, kind: input, shape index: {}]   ;;  %s2299_s16 = inlined_call_operand.vmem [shape: f32[1,32], index: 16, kind: input, shape index: {}]   ;;  %s2300_s17 = inlined_call_operand.vmem [shape: f32[1,32], index: 17, kind: input, shape index: {}]   ;;  %s2301_s18 = inlined_call_operand.hbm [shape: f32[2,8,32], index: 18, kind: output, shape index: {}]  }
   0x1   :  { %2314 = sst [smem:[#allocation22_spill]] %s2283_s0 }
   0x2   :  { %2315 = sst [smem:[#allocation23_spill]] %s2284_s1 }
   0x3   :  { %2316 = sst [smem:[#allocation24_spill]] %s2285_s2 }
   0x4   :  { %2317 = sst [smem:[#allocation25_spill]] %s2291_s8 }
   0x5   :  { %2318 = sst [smem:[#allocation26_spill]] %s2294_s11 }
   0x6   :  { %2319 = sst [smem:[#allocation27_spill]] %s2295_s12 }
   0x7   :  { %2320 = sst [smem:[#allocation28_spill]] %s2296_s13 }
   0x8   :  { %2321 = sst [smem:[#allocation29_spill]] %s2297_s14 }
   0x9   :  { %2322 = sst [smem:[#allocation30_spill]] %s2298_s15 }
   0xa   :  { %2323 = sst [smem:[#allocation31_spill]] %s2299_s16 }
   0xb   :  { %2324 = sst [smem:[#allocation32_spill]] %s2300_s17 }
   0xc   :  { %2325 = sst [smem:[#allocation33_spill]] %s2301_s18 }
   0xd   :  { %23 = vsyncpa [#allocation3], 0 }
   0xe   :  { %25 = vsyncpa [#allocation3 + $0x1], 0 }
   0xf   :  { %26 = vsyncpa [#allocation6], 0 }
  0x10   :  { %28 = vsyncpa [#allocation6 + $0x1], 0 }
  0x11   :  { %29 = vsyncpa [#allocation9], 0 }
  0x12   :  { %30 = vsyncpa [#allocation4], 0 }
  0x13   :  { %32 = vsyncpa [#allocation4 + $0x1], 0  ;;  %s1932_s27 = smov 0   ;;  %s1934_s28 = smov 0  }
  0x14   :  { %s1936_s29 = smov 0   ;;  %s1938_s30 = smov 0  }
  0x15 LB: > { %2326 = sst [smem:[#allocation16_spill]] %s1815_s27  ;;  %s1956_s20 = sadd.s32 4294967295, %s1827_s30   ;;  %s1827_s30 = sphi %s1938_s30, %s2355_s30   ;;  %s1823_s29 = sphi %s1936_s29, %s2357_s29   ;;  %s1819_s28 = sphi %s1934_s28, %s2359_s28   ;;  %s1815_s27 = sphi %s1932_s27, %s2358_s27  }
  0x16   : > { %2327 = sst [smem:[#allocation17_spill]] %s1823_s29  ;;  %p1479_p0 = scmp.ge.s32.totalorder %s1827_s30, 1 }
  0x17   : > { %s2328_s8 = sld [smem:[#allocation25_spill]]  ;;  %p59_p1 = scmp.eq.s32.totalorder %s1956_s20, 0 }
  0x18   : > { %p457_p2 = scmp.lt.s32.totalorder %s1827_s30, 3  ;;  %s1829_s22 = smov [#allocation7]  }
  0x19   : > { %s488_s2 = sshll.u32 %s1829_s22, 4  ;;  %s2330_s12 = sld [smem:[#allocation27_spill]]  ;;  %s489_s2 = int_to_ptr.vmem [resolvable:$true] %s488_s2 }
  0x1a   : > { %p1961_p3 = pnand %p1479_p0, %p457_p2  ;;  %s1830_s26 = smov [#allocation8]  }
  0x1b   : > { %s511_s0 = sshll.u32 %s1830_s26, 4  ;;  %s1831_s19 = smov 128   ;;  %s512_s0 = int_to_ptr.vmem [resolvable:$true] %s511_s0 }
  0x1c   : > { %p1530_p4 = pneg %p1961_p3  ;;  %s1832_s22 = smov 8  }
  0x1d   : > { %s486_s1 = sshll.u32 %s2328_s8, 4  ;;  %s1478_s23 = sadd.s32 4294967294, %s1827_s30   ;;  %s487_s1 = int_to_ptr.hbm [resolvable:$true] %s486_s1 }
  0x1e   : > { %p1531_p6 = pnand %p1530_p4, %p59_p1  ;;  %s1975_s24 = sadd.s32 1, %s1827_s30  }
  0x1f   : > { %s509_s25 = sshll.u32 %s2330_s12, 4  ;;  %2331 = sst [smem:[#allocation18_spill]] %s1975_s24  ;;  %s510_s25 = int_to_ptr.hbm [resolvable:$true] %s509_s25 }
  0x20   : > { %1533 = dma.hbm_to_vmem [thread:$0]  (!%p1531_p6), %s487_s1, 512, %s489_s2, [#allocation6], %s1831_s19, %s1831_s19, %s1832_s22  }
  0x21   : > { %1536 = dma.hbm_to_vmem [thread:$0]  (!%p1531_p6), %s510_s25, 512, %s512_s0, [#allocation9], %s1831_s19, %s1831_s19, %s1832_s22  }
  0x22   : > { %s42_s8 = ssub.s32 %s1827_s30, %s1975_s24  ;;  %s45_s12 = sadd.s32 1, %s1823_s29 }
  0x23   : > { %p43_p7 = scmp.eq.s32.totalorder %s42_s8, 0  ;;  %p52_p8 = scmp.ne.s32.totalorder %s1823_s29, %s1819_s28 }
  0x24   : > { %p53_p9 = scmp.eq.s32.totalorder %s1827_s30, 0  ;;  %p58_p10 = scmp.ne.s32.totalorder %s1819_s28, %s1815_s27 }
  0x25   : > { %s1986_s26 = scalar_select %p43_p7, %s1823_s29, %s45_s12  }
  0x26   : > { %p1988_p11 = por %p53_p9, %p52_p8  ;;  %p1994_p12 = por %p59_p1, %p58_p10 }
  0x27   : > { %2332 = sst [smem:[#allocation19_spill]] %s1986_s26  ;;  %p444_p13 = scmp.eq.s32.totalorder %s1956_s20, 1 }
  0x28   : > { %p450_p0 = scmp.eq.s32.totalorder %s1478_s23, 1  ;;  %p1550_p2 = scmp.lt.s32.totalorder %s1827_s30, 2 }
  0x29   : > { %s2001_s8 = sand.u32 1, %s1823_s29   ;;  %p2003_p4 = por %p444_p13, %p52_p8 }
  0x2a   : > { %p2007_p6 = por %p450_p0, %p58_p10  ;;  %s1483_s25 = sshll.u32 %s2001_s8, 3 }
  0x2b   : > { %s2335_s12 = scalar_select %p2003_p4, 1, 0 }
  0x2c   : > { %s2337_s2 = scalar_select %p2007_p6, 1, 0 }
  0x2d   : > { %2336 = sst [smem:[#allocation20_spill]] %s2335_s12  ;;  %s1484_s0 = sshll.u32 %s1827_s30, 3 }
  0x2e   : > { %2338 = sst [smem:[#allocation21_spill]] %s2337_s2  ;;  %s544_s23 = scalar_lea.vmem [#allocation2], %s1483_s25 }
  0x2f   : > { %s2339_s26 = sld [smem:[#allocation22_spill]]  ;;  %s552_s27 = sshll.u32 %s544_s23, 4  ;;  %s553_s27 = int_to_ptr.vmem [resolvable:$true] %s552_s27 }
  0x30   : > { %p2018_p7 = pnand %p1550_p2, %p1988_p11  ;;  %s559_s12 = sand.u32 1, %s1827_s30  }
  0x31   : > { %s541_s2 = scalar_lea.sflag [#allocation3], %s2001_s8 }
  0x32   : > { %p1693_p9 = pneg %p2018_p7 }
  0x35   : > { %s548_s24 = scalar_lea.hbm %s2339_s26, %s1484_s0  ;;  %s1696_s25 = scalar_lea.hbm %s2339_s26, 16 }
  0x36   : > { %s550_s29 = sshll.u32 %s548_s24, 4  ;;  %s551_s29 = int_to_ptr.hbm [resolvable:$true] %s550_s29 }
  0x37   : > { %s1689_s16 = sshra.s32 %s551_s29, 4  ;;  %s1690_s16 = int_to_ptr.hbm [resolvable:$true] %s1689_s16 }
  0x38   : > { %s1691_s15 = scalar_lea.hbm %s1690_s16, 8  ;;  %p1697_p11 = scmp.lt.s32.totalorder %s1690_s16, %s2339_s26 }
  0x39   : > { %p1692_p8 = scmp.ne.s32.totalorder %s1690_s16, %s1691_s15  ;;  %p1698_p0 = scmp.lt.s32.totalorder %s1696_s25, %s1691_s15 }
  0x3b   : > { %p1694_p10 = pnand %p1693_p9, %p1692_p8  ;;  %p1699_p2 = por %p1698_p0, %p1697_p11 }
  0x3d   : > { %p1695_p13 = pneg %p1694_p10 }
  0x3f   : > { %p1700_p5 = pnand %p1699_p2, %p1695_p13 }
  0x41   : > { %1703 = shalt.err (!%p1700_p5)
}
  0x42   : > { %1540 = dma.hbm_to_vmem [thread:$0]  (!%p2018_p7), %s551_s29, 128, %s553_s27, %s541_s2  }
  0x43   : > { %s2341_s14 = sld [smem:[#allocation23_spill]]  ;;  %s562_s24 = scalar_lea.vmem [#allocation5], %s2001_s8 }
  0x44   : > { %s569_s17 = sshll.u32 %s562_s24, 4  ;;  %s560_s16 = scalar_lea.sflag [#allocation6], %s559_s12  ;;  %s570_s17 = int_to_ptr.vmem [resolvable:$true] %s569_s17 }
  0x49   : > { %s565_s13 = scalar_lea.hbm %s2341_s14, %s1827_s30  ;;  %s1726_s29 = scalar_lea.hbm %s2341_s14, 2 }
  0x4a   : > { %s567_s11 = sshll.u32 %s565_s13, 4  ;;  %s568_s11 = int_to_ptr.hbm [resolvable:$true] %s567_s11 }
  0x4b   : > { %s1719_s15 = sshra.s32 %s568_s11, 4  ;;  %s1720_s15 = int_to_ptr.hbm [resolvable:$true] %s1719_s15 }
  0x4c   : > { %s1721_s25 = scalar_lea.hbm %s1720_s15, 1  ;;  %p1727_p13 = scmp.lt.s32.totalorder %s1720_s15, %s2341_s14 }
  0x4d   : > { %p1722_p5 = scmp.ne.s32.totalorder %s1720_s15, %s1721_s25  ;;  %p1728_p11 = scmp.lt.s32.totalorder %s1726_s29, %s1721_s25 }
  0x4f   : > { %p1724_p8 = pnand %p1722_p5, %p1693_p9  ;;  %p1729_p0 = por %p1728_p11, %p1727_p13 }
  0x51   : > { %p1725_p10 = pneg %p1724_p8 }
  0x53   : > { %p1730_p2 = pnand %p1729_p0, %p1725_p10 }
  0x55   : > { %1733 = shalt.err (!%p1730_p2)
}
  0x56   : > { %1543 = dma.hbm_to_vmem [thread:$0]  (!%p2018_p7), %s568_s11, 16, %s570_s17, %s560_s16  }
  0x57   : > { %578 = sbr.rel (%p1961_p3) target bundleno = 2409 (0x969), region = 92  ;;  %s2056_s13 = sand.u32 (!%p1961_p3), 1, %s1819_s28  }
  0x58   : > { %s1486_s8 = sshll.u32 (!%p1961_p3), %s2056_s13, 3  ;;  %s581_s12 = scalar_lea.sflag (!%p1961_p3), [#allocation3], %s2056_s13 }
  0x59   : > { %s584_s22 = scalar_lea.vmem (!%p1961_p3), [#allocation2], %s1486_s8 }
  0x5c   : > { %1794 = dma.done.wait (%p1994_p12), %s581_s12, 128  }
  0x5d   : > { %1796 = vsyncadd (%p1994_p12), %s581_s12, 4294967168  ;;  %s590_s11 = sand.u32 1, %s1956_s20   ;;  %s593_s21 = scalar_lea.vmem [#allocation5], %s2056_s13 }
  0x5e   : > { %s591_s18 = scalar_lea.sflag [#allocation6], %s590_s11 }
  0x5f   : > { %1798 = dma.done.wait (%p1994_p12), %s591_s18, 16  }
  0x60   : > { %1800 = vsyncadd (%p1994_p12), %s591_s18, 4294967280 }
  0x61   : > { %1802 = dma.done.wait (%p59_p1), [#allocation6], 512  }
  0x62   : > { %1804 = vsyncadd (%p59_p1), [#allocation6], 4294966784 }
  0x63   : > { %1806 = dma.done.wait (%p59_p1), [#allocation9], 512  }
  0x64   : > { %1808 = vsyncadd (%p59_p1), [#allocation9], 4294966784  ;;  %v699_v0 = vld [vmem:[%s2287_s4 + $0x18] sm:$0xff]  ;;  %s2342_s1 = sld [smem:[#allocation24_spill]]  ;;  %v698_v2 = vld [vmem:[%s2287_s4 + $0x10] sm:$0xff]  ;;  %vm671_vm0 = vcmask 261120  }
  0x65   : > { %716 = vmatpush.msra.mxu1 %v699_v0  ;;  %v697_v4 = vld [vmem:[%s2287_s4 + $0x8] sm:$0xff]  ;;  %v696_v6 = vld [vmem:[%s2287_s4] sm:$0xff]  ;;  %v727_v8 = vld [vmem:[%s2289_s6 + $0x18] sm:$0xff]  ;;  %vm764_vm1 = vcmask 64512   ;;  %s1833_s18 = smov 120   ;;  %s1834_s17 = smov 112  }
  0x66   : > { %v726_v9 = vld [vmem:[%s2289_s6 + $0x10] sm:$0xff]  ;;  %v2110_v10 = vld [vmem:[%s584_s22] sm:$0xff]  ;;  %744 = vmatpush.msra.mxu2 %v727_v8  ;;  %s1835_s16 = smov 104   ;;  %s2343_s22 = sld [smem:[#allocation26_spill]] }
  0x67   : > { %717 = vmatpush.msra.mxu1 %v698_v2  ;;  %v725_v11 = vld [vmem:[%s2289_s6 + $0x8] sm:$0xff]  ;;  %v724_v12 = vld [vmem:[%s2289_s6] sm:$0xff]  ;;  %v752_v38 = vld [vmem:[#allocation7] sm:$0xff]  ;;  %s2344_s12 = sld [smem:[#allocation28_spill]] }
  0x68   : > { %745 = vmatpush.msra.mxu2 %v726_v9  ;;  %v1594_v13 = vld [vmem:[%s2288_s5] ss:$0 sm:$0xff]  ;;  %s2345_s23 = sld [smem:[#allocation29_spill]] }
  0x69   : > { %718 = vmatpush.msra.mxu1 %v697_v4  ;;  %v1595_v14 = vld [vmem:[%s2286_s3] ss:$0 sm:$0xff]  ;;  %s2347_s25 = sld [smem:[#allocation31_spill]] }
  0x6a   : > { %v666_v1 = vld [vmem:[%s2342_s1 + $0x18] sm:$0xff]  ;;  %v665_v3 = vld [vmem:[%s2342_s1 + $0x10] sm:$0xff]  ;;  %v664_v5 = vld [vmem:[%s2342_s1 + $0x8] sm:$0xff]  ;;  %746 = vmatpush.msra.mxu2 %v725_v11  ;;  %s2348_s29 = sld [smem:[#allocation33_spill]] }
  0x6b   : > { %687 = vmatpush.msra.mxu0 %v666_v1  ;;  %v663_v7 = vld [vmem:[%s2342_s1] sm:$0xff]  ;;  %719 = vmatpush.msra.mxu1 %v696_v6 }
  0x6c   : > { %1491 = vmatmul.msk.f32.vlgmr.msra.gmra.mxu1 %vm671_vm0, %v2110_v10  ;;  %747 = vmatpush.msra.mxu2 %v724_v12  ;;  %v1596_v20 = vld [vmem:[%s2290_s7] ss:$0 sm:$0xff] }
  0x6d   : > { %688 = vmatpush.msra.mxu0 %v665_v3  ;;  %1492 = vmatmul.msk.f32.vlgmr.msra.gmra.mxu2 %vm671_vm0, %v2110_v10  ;;  %v2149_v25 = vld [vmem:[%s593_s21] ss:$0 sm:$0xff]  ;;  %s1355_s21 = scalar_lea.sflag [#allocation4], %s2056_s13 }
  0x6e   : > { %v753_v57 = vld [vmem:[#allocation7 + $0x8] sm:$0xff] }
  0x6f   : > { %689 = vmatpush.msra.mxu0 %v664_v5 }
  0x71   : > { %690 = vmatpush.msra.mxu0 %v663_v7 }
  0x72   : > { %1490 = vmatmul.msk.f32.vlgmr.msra.gmra.mxu0 %vm671_vm0, %v2110_v10 }
  0xe9   : > { %v721_v15 = vpop.f32.mrf.mxu1 }
  0xea   : > { %v2130_v17 = vadd.f32 %v1594_v13, %v721_v15 }
  0xec   : > { %864 = vrot.lane.b32.xlu0 %v2130_v17, %s1833_s18  ;;  %1493 = vmatpush.xpose.msk.msrb.mxu0 %vm764_vm1, %v2130_v17 }
  0xef   : > { %v692_v16 = vpop.f32.mrf.mxu0 }
  0xf0   : > { %v693_v18 = vadd.f32 %v1595_v14, %v692_v16  ;;  %v749_v21 = vpop.f32.mrf.mxu2  ;;  %856 = vmatpush.msra.mxu0 %v752_v38  ;;  %v1598_v16 = vld [vmem:[%s2292_s9] ss:$0 sm:$0xff] }
  0xf1   : > { %v2139_v22 = vadd.f32 %v1596_v20, %v749_v21 }
  0xf2   : > { %v695_v19 = vmul.f32 0.35355338, %v693_v18 }
  0xf3   : > { %833 = vmatpush.msra.mxu3 %v2139_v22 }
  0xf4   : > { %1494 = vmatmul.msk.f32.vlgmr.msrb.gmra.mxu0 %vm764_vm1, %v695_v19  ;;  %862 = vrot.lane.b32.xlu0 %v695_v19, %s1833_s18 }
  0xf5   : > { %959 = vmatpush.msrb.mxu3 %v753_v57 }
  0xfc   : > { %915 = vrot.lane.b32.xlu0 %v2139_v22, %s1833_s18  ;;  %s2351_s18 = sld [smem:[#allocation32_spill]] }
 0x104   : > { %965 = vrot.lane.b32.xlu0 %v695_v19, %s1834_s17 }
 0x10c   : > { %1067 = vrot.lane.b32.xlu0 %v695_v19, %s1835_s16 }
 0x15e   : > { %v865_v23 = vpop.permute.xlu0 %864 }
 0x15f   : > { %1497 = vmatpush.xpose.msk.msrb.mxu1 %vm764_vm1, %v865_v23 }
 0x166   : > { %v863_v24 = vpop.permute.xlu0 %862 }
 0x167   : > { %1498 = vmatmul.msk.f32.vlgmr.msrb.gmra.mxu1 %vm764_vm1, %v863_v24 }
 0x16e   : > { %v916_v28 = vpop.permute.xlu0 %915 }
 0x16f   : > { %936 = vmatpush.msrb.mxu2 %v916_v28 }
 0x171   : > { %v788_v26 = vpop.f32.mrf.mxu0 }
 0x172   : > { %v789_v27 = vadd.f32 %v2149_v25, %v788_v26 }
 0x174   : > { %v791_v29 = vsel %vm764_vm1, %v789_v27, -inf }
 0x175   : > { %792 = vmax.xlane.f32.xlu1 %v791_v29 }
 0x176   : > { %v966_v8 = vpop.permute.xlu0 %965 }
 0x17e   : > { %v1068_v12 = vpop.permute.xlu0 %1067 }
 0x1e4   : > { %v887_v32 = vpop.f32.mrf.mxu1 }
 0x1e5   : > { %v888_v33 = vadd.f32 %v2149_v25, %v887_v32 }
 0x1e7   : > { %v890_v35 = vsel %vm764_vm1, %v888_v33, -inf }
 0x1e8   : > { %v793_v30 = vpop.xlane.xlu1 %792  ;;  %891 = vmax.xlane.f32.xlu1 %v890_v35 }
 0x1e9   : > { %v794_v31 = vsub.f32 %v789_v27, %v793_v30 }
 0x1eb   : > { %v795_v34 = vmul.f32 1.442695, %v794_v31 }
 0x1ed   : > { %1605 = vpow2.f32 %v795_v34 }
 0x1f3   : > { %v1606_v36 = vpop.eup %1605 }
 0x1f4   : > { %v797_v37 = vsel %vm764_vm1, %v1606_v36, 0.0 }
 0x1f5   : > { %798 = vadd.xlane.f32.xlu2 %v797_v37 }
 0x201   : > { %967 = vrot.lane.b32.xlu1 %v2130_v17, %s1834_s17 }
 0x25b   : > { %v892_v39 = vpop.xlane.xlu1 %891 }
 0x25c   : > { %v893_v40 = vsub.f32 %v888_v33, %v892_v39 }
 0x25e   : > { %v894_v41 = vmul.f32 1.442695, %v893_v40 }
 0x260   : > { %1607 = vpow2.f32 %v894_v41 }
 0x266   : > { %v1608_v43 = vpop.eup %1607 }
 0x267   : > { %v896_v44 = vsel %vm764_vm1, %v1608_v43, 0.0 }
 0x268   : > { %v799_v42 = vpop.xlane.xlu2 %798  ;;  %897 = vadd.xlane.f32.xlu2 %v896_v44 }
 0x269   : > { %1609 = vrcp.f32 %v799_v42  ;;  %v811_v48 = vand.u32 2147483648, %v799_v42  ;;  %v809_v50 = vand.u32 2147483647, %v799_v42  ;;  %vm805_vm3 = vweird.f32 %v799_v42 }
 0x26b   : > { %v812_v52 = vor.u32 1.1754944e-38, %v811_v48  ;;  %vm810_vm5 = vcmp.eq.f32.partialorder %v809_v50, 8.507059e+37  ;;  %v755_v48 = vld [vmem:[#allocation7 + $0x18] sm:$0xff] }
 0x26f   : > { %v1610_v45 = vpop.eup %1609 }
 0x270   : > { %v801_v46 = vmul.f32 %v1610_v45, %v799_v42  ;;  %vm806_vm2 = vweird.f32 %v1610_v45 }
 0x271   : > { %vm807_vm4 = vmor %vm805_vm3, %vm806_vm2 }
 0x272   : > { %v802_v47 = vsub.f32 1.0, %v801_v46 }
 0x273   : > { %v968_v53 = vpop.permute.xlu1 %967 }
 0x274   : > { %v803_v49 = vmul.f32 %v1610_v45, %v802_v47  ;;  %1501 = vmatpush.xpose.msk.msrb.mxu0 %vm764_vm1, %v968_v53  ;;  %v754_v47 = vld [vmem:[#allocation7 + $0x10] sm:$0xff] }
 0x275   : > { %1061 = vmatpush.msra.mxu2 %v754_v47 }
 0x276   : > { %v804_v51 = vadd.f32 %v1610_v45, %v803_v49 }
 0x278   : > { %v808_v54 = vsel %vm807_vm4, %v1610_v45, %v804_v51 }
 0x279   : > { %v813_v55 = vsel %vm810_vm5, %v812_v52, %v808_v54 }
 0x27a   : > { %v814_v56 = vmul.f32 %v1606_v36, %v813_v55 }
 0x27c   : > { %1495 = vmatmul.msk.f32.vlgmr.msra.gmra.mxu3 %vm764_vm1, %v814_v56 }
 0x280   : > { %1069 = vrot.lane.b32.xlu2 %v2130_v17, %s1835_s16 }
 0x2db   : > { %v898_v58 = vpop.xlane.xlu2 %897 }
 0x2dc   : > { %1611 = vrcp.f32 %v898_v58  ;;  %v910_v63 = vand.u32 2147483648, %v898_v58  ;;  %v908_v1 = vand.u32 2147483647, %v898_v58  ;;  %vm904_vm7 = vweird.f32 %v898_v58 }
 0x2de   : > { %v911_v3 = vor.u32 1.1754944e-38, %v910_v63  ;;  %vm909_vm9 = vcmp.eq.f32.partialorder %v908_v1, 8.507059e+37 }
 0x2e2   : > { %v1612_v59 = vpop.eup %1611 }
 0x2e3   : > { %v900_v60 = vmul.f32 %v1612_v59, %v898_v58  ;;  %v1070_v61 = vpop.permute.xlu2 %1069  ;;  %vm905_vm6 = vweird.f32 %v1612_v59 }
 0x2e4   : > { %1505 = vmatpush.xpose.msk.msra.mxu3 %vm764_vm1, %v1070_v61  ;;  %vm906_vm8 = vmor %vm904_vm7, %vm905_vm6 }
 0x2e5   : > { %v901_v62 = vsub.f32 1.0, %v900_v60 }
 0x2e7   : > { %v902_v0 = vmul.f32 %v1612_v59, %v901_v62 }
 0x2e9   : > { %v903_v2 = vadd.f32 %v1612_v59, %v902_v0 }
 0x2eb   : > { %v907_v4 = vsel %vm906_vm8, %v1612_v59, %v903_v2 }
 0x2ec   : > { %v912_v5 = vsel %vm909_vm9, %v911_v3, %v907_v4 }
 0x2ed   : > { %v913_v6 = vmul.f32 %v1608_v43, %v912_v5  ;;  %v1836_v5 = vmov 32.0  }
 0x2ef   : > { %1499 = vmatmul.msk.f32.vlgmr.msrb.gmra.mxu2 %vm764_vm1, %v913_v6 }
 0x2ff   : > { %v835_v7 = vpop.f32.mrf.mxu3 }
 0x300   : > { %1496 = vmatmul.msk.f32.vlgmr.msra.gmra.mxu0 %vm764_vm1, %v835_v7 }
 0x308   : > { %1502 = vmatmul.msk.f32.vlgmr.msrb.gmra.mxu0 %vm764_vm1, %v966_v8 }
 0x372   : > { %v938_v9 = vpop.f32.mrf.mxu2 }
 0x373   : > { %1500 = vmatmul.msk.f32.vlgmr.msrb.gmra.mxu3 %vm764_vm1, %v938_v9 }
 0x37b   : > { %1506 = vmatmul.msk.f32.vlgmr.msra.gmra.mxu3 %vm764_vm1, %v1068_v12 }
 0x37d   : > { %v858_v11 = vpop.f32.mrf.mxu0 }
 0x37e   : > { %v861_v17 = vadd.f32 %v1598_v16, %v858_v11 }
 0x385   : > { %v990_v13 = vpop.f32.mrf.mxu0 }
 0x386   : > { %v991_v14 = vadd.f32 %v2149_v25, %v990_v13 }
 0x388   : > { %v993_v15 = vsel %vm764_vm1, %v991_v14, -inf }
 0x389   : > { %994 = vmax.xlane.f32.xlu0 %v993_v15 }
 0x39d   : > { %1017 = vrot.lane.b32.xlu0 %v2139_v22, %s1834_s17  ;;  %s2346_s17 = sld [smem:[#allocation30_spill]] }
 0x3f6   : > { %v961_v18 = vpop.f32.mrf.mxu3 }
 0x3f7   : > { %v2176_v19 = vadd.f32 %v961_v18, %v861_v17  ;;  %v1212_v17 = vld [vmem:[#allocation8 + $0x18] sm:$0xff]  ;;  %v1211_v18 = vld [vmem:[#allocation8 + $0x10] sm:$0xff] }
 0x3f8   : > { %1232 = vmatpush.msrb.mxu2 %v1212_v17 }
 0x3fa   : > { %1233 = vmatpush.msrb.mxu2 %v1211_v18 }
 0x3fc   : > { %v995_v20 = vpop.xlane.xlu0 %994 }
 0x3fd   : > { %v996_v21 = vsub.f32 %v991_v14, %v995_v20  ;;  %v1209_v20 = vld [vmem:[#allocation8] sm:$0xff] }
 0x3fe   : > { %v1092_v24 = vpop.f32.mrf.mxu3 }
 0x3ff   : > { %v997_v23 = vmul.f32 1.442695, %v996_v21  ;;  %v1093_v26 = vadd.f32 %v2149_v25, %v1092_v24 }
 0x401   : > { %1613 = vpow2.f32 %v997_v23  ;;  %v1095_v27 = vsel %vm764_vm1, %v1093_v26, -inf }
 0x402   : > { %1096 = vmax.xlane.f32.xlu2 %v1095_v27 }
 0x407   : > { %v1614_v28 = vpop.eup %1613 }
 0x408   : > { %v999_v29 = vsel %vm764_vm1, %v1614_v28, 0.0 }
 0x409   : > { %1000 = vadd.xlane.f32.xlu1 %v999_v29 }
 0x40f   : > { %v1018_v30 = vpop.permute.xlu0 %1017 }
 0x410   : > { %1038 = vmatpush.msra.mxu1 %v1018_v30 }
 0x412   : > { %1163 = vmatpush.msrb.mxu1 %v755_v48  ;;  %v1289_v48 = vld [vmem:[%s2345_s23 + $0x28] sm:$0xff] }
 0x422   : > { %1119 = vrot.lane.b32.xlu1 %v2139_v22, %s1835_s16  ;;  %s1513_s16 = sshll.u32 %s1956_s20, 3  ;;  %s660_s20 = scalar_lea.vmem [#allocation10], %s1486_s8 }
 0x423   : > { %s1365_s2 = scalar_lea.hbm %s2348_s29, %s1513_s16  ;;  %s1367_s24 = sshll.u32 %s660_s20, 4  ;;  %s1368_s24 = int_to_ptr.vmem [resolvable:$true] %s1367_s24 }
 0x475   : > { %v1097_v31 = vpop.xlane.xlu2 %1096 }
 0x476   : > { %v1098_v32 = vsub.f32 %v1093_v26, %v1097_v31 }
 0x478   : > { %v1099_v34 = vmul.f32 1.442695, %v1098_v32  ;;  %v1599_v32 = vld [vmem:[%s2293_s10] ss:$0 sm:$0xff] }
 0x47c   : > { %v1001_v33 = vpop.xlane.xlu1 %1000 }
 0x47d   : > { %1615 = vrcp.f32 %v1001_v33  ;;  %v1013_v39 = vand.u32 2147483648, %v1001_v33  ;;  %v1011_v41 = vand.u32 2147483647, %v1001_v33  ;;  %vm1007_vm11 = vweird.f32 %v1001_v33 }
 0x47e   : > { %1617 = vpow2.f32 %v1099_v34 }
 0x47f   : > { %v1014_v22 = vor.u32 1.1754944e-38, %v1013_v39  ;;  %vm1012_vm13 = vcmp.eq.f32.partialorder %v1011_v41, 8.507059e+37 }
 0x483   : > { %v1616_v35 = vpop.eup %1615 }
 0x484   : > { %v1003_v25 = vmul.f32 %v1616_v35, %v1001_v33  ;;  %v1618_v36 = vpop.eup %1617  ;;  %vm1008_vm10 = vweird.f32 %v1616_v35 }
 0x485   : > { %v1101_v38 = vsel %vm764_vm1, %v1618_v36, 0.0  ;;  %vm1009_vm12 = vmor %vm1007_vm11, %vm1008_vm10  ;;  %vm1296_vm11 = vcmask 523264  }
 0x486   : > { %v1004_v37 = vsub.f32 1.0, %v1003_v25  ;;  %1102 = vadd.xlane.f32.xlu2 %v1101_v38 }
 0x488   : > { %v1005_v40 = vmul.f32 %v1616_v35, %v1004_v37  ;;  %v1601_v37 = vld [vmem:[%s2344_s12] ss:$0 sm:$0xff] }
 0x48a   : > { %v1006_v42 = vadd.f32 %v1616_v35, %v1005_v40 }
 0x48c   : > { %v1010_v43 = vsel %vm1009_vm12, %v1616_v35, %v1006_v42  ;;  %v1600_v35 = vld [vmem:[%s2343_s22] ss:$0 sm:$0xff]  ;;  %s2349_s22 = smov %s2348_s29 }
 0x48d   : > { %v1015_v44 = vsel %vm1012_vm13, %v1014_v22, %v1010_v43  ;;  %v1291_v22 = vld [vmem:[%s2345_s23 + $0x38] sm:$0xff]  ;;  %s1769_s8 = scalar_lea.hbm %s2349_s22, 16 }
 0x48e   : > { %v1016_v45 = vmul.f32 %v1614_v28, %v1015_v44  ;;  %1308 = vmatpush.msrb.mxu3 %v1291_v22  ;;  %v1603_v22 = vld [vmem:[%s2347_s25] ss:$0 sm:$0xff] }
 0x490   : > { %1503 = vmatmul.msk.f32.vlgmr.msra.gmra.mxu1 %vm764_vm1, %v1016_v45  ;;  %v1290_v45 = vld [vmem:[%s2345_s23 + $0x30] sm:$0xff] }
 0x491   : > { %1309 = vmatpush.msrb.mxu3 %v1290_v45 }
 0x493   : > { %1310 = vmatpush.msrb.mxu3 %v1289_v48 }
 0x494   : > { %v1120_v46 = vpop.permute.xlu1 %1119 }
 0x495   : > { %1140 = vmatpush.msra.mxu0 %v1120_v46 }
 0x4f9   : > { %v1103_v49 = vpop.xlane.xlu2 %1102 }
 0x4fa   : > { %1619 = vrcp.f32 %v1103_v49  ;;  %v1115_v53 = vand.u32 2147483648, %v1103_v49  ;;  %v1113_v55 = vand.u32 2147483647, %v1103_v49  ;;  %vm1109_vm15 = vweird.f32 %v1103_v49 }
 0x4fb   : > { %1621 = vrcp.f32 %v1836_v5 }
 0x4fc   : > { %v1116_v57 = vor.u32 1.1754944e-38, %v1115_v53  ;;  %vm1114_vm3 = vcmp.eq.f32.partialorder %v1113_v55, 8.507059e+37  ;;  %v1287_v53 = vld [vmem:[%s2345_s23 + $0x18] sm:$0xff] }
 0x500   : > { %v1620_v50 = vpop.eup %1619 }
 0x501   : > { %v1105_v51 = vmul.f32 %v1620_v50, %v1103_v49  ;;  %vm1110_vm14 = vweird.f32 %v1620_v50  ;;  %v1622_v6 = vpop.eup %1621 }
 0x502   : > { %vm1111_vm2 = vmor %vm1109_vm15, %vm1110_vm14  ;;  %v1176_v7 = vmul.f32 32.0, %v1622_v6  ;;  %vm1180_vm4 = vweird.f32 %v1622_v6 }
 0x503   : > { %v1106_v52 = vsub.f32 1.0, %v1105_v51  ;;  %v1288_v51 = vld [vmem:[%s2345_s23 + $0x20] sm:$0xff] }
 0x504   : > { %v1177_v8 = vsub.f32 1.0, %v1176_v7  ;;  %1311 = vmatpush.msrb.mxu3 %v1288_v51 }
 0x505   : > { %v1107_v54 = vmul.f32 %v1620_v50, %v1106_v52 }
 0x506   : > { %v1178_v9 = vmul.f32 %v1622_v6, %v1177_v8  ;;  %1312 = vmatpush.msrb.mxu3 %v1287_v53 }
 0x507   : > { %v1108_v56 = vadd.f32 %v1620_v50, %v1107_v54 }
 0x508   : > { %v1179_v11 = vadd.f32 %v1622_v6, %v1178_v9 }
 0x509   : > { %v1112_v58 = vsel %vm1111_vm2, %v1620_v50, %v1108_v56  ;;  %v1286_v56 = vld [vmem:[%s2345_s23 + $0x10] sm:$0xff] }
 0x50a   : > { %v1117_v59 = vsel %vm1114_vm3, %v1116_v57, %v1112_v58  ;;  %v2191_v12 = vsel %vm1180_vm4, %v1622_v6, %v1179_v11  ;;  %1313 = vmatpush.msrb.mxu3 %v1286_v56  ;;  %v1285_v58 = vld [vmem:[%s2345_s23 + $0x8] sm:$0xff] }
 0x50b   : > { %v1118_v60 = vmul.f32 %v1618_v36, %v1117_v59 }
 0x50c   : > { %1314 = vmatpush.msrb.mxu3 %v1285_v58 }
 0x50d   : > { %v1040_v61 = vpop.f32.mrf.mxu1  ;;  %1507 = vmatmul.msk.f32.vlgmr.msra.gmra.mxu0 %vm764_vm1, %v1118_v60  ;;  %v1284_v60 = vld [vmem:[%s2345_s23] sm:$0xff] }
 0x50e   : > { %1504 = vmatmul.msk.f32.vlgmr.msra.gmra.mxu2 %vm764_vm1, %v1040_v61  ;;  %1315 = vmatpush.msrb.mxu3 %v1284_v60 }
 0x58a   : > { %v1142_v62 = vpop.f32.mrf.mxu0 }
 0x58b   : > { %1508 = vmatmul.msk.f32.vlgmr.msrb.gmra.mxu1 %vm764_vm1, %v1142_v62 }
 0x591   : > { %v1063_v63 = vpop.f32.mrf.mxu2 }
 0x592   : > { %v1066_v0 = vadd.f32 %v1063_v63, %v2176_v19  ;;  %v1210_v19 = vld [vmem:[#allocation8 + $0x8] sm:$0xff] }
 0x593   : > { %1234 = vmatpush.msrb.mxu2 %v1210_v19 }
 0x595   : > { %1235 = vmatpush.msrb.mxu2 %v1209_v20 }
 0x608   : > { %v1165_v1 = vpop.f32.mrf.mxu1 }
 0x609   : > { %v1168_v2 = vadd.f32 %v1165_v1, %v1066_v0 }
 0x60b   : > { %v1169_v3 = vadd.f32 %v1168_v2, %v2110_v10 }
 0x60d   : > { %v1172_v4 = vsel %vm671_vm0, %v1169_v3, 0.0 }
 0x60e   : > { %1173 = vadd.xlane.f32.xlu2 %v1172_v4 }
 0x681   : > { %v1174_v13 = vpop.xlane.xlu2 %1173 }
 0x682   : > { %v1182_v14 = vmul.f32 %v2191_v12, %v1174_v13 }
 0x684   : > { %v1183_v15 = vsub.f32 %v1169_v3, %v1182_v14 }
 0x686   : > { %v1184_v16 = vmul.f32 %v1183_v15, %v1183_v15 }
 0x688   : > { %v1185_v10 = vsel %vm671_vm0, %v1184_v16, 0.0 }
 0x689   : > { %1186 = vadd.xlane.f32.xlu2 %v1185_v10 }
 0x6fc   : > { %v1187_v21 = vpop.xlane.xlu2 %1186 }
 0x6fd   : > { %v1188_v23 = vmul.f32 %v1187_v21, %v2191_v12 }
 0x6ff   : > { %v1189_v24 = vadd.f32 1e-12, %v1188_v23 }
 0x701   : > { %1623 = vrsqrt.f32 %v1189_v24  ;;  %vm1196_vm5 = vweird.f32 %v1189_v24 }
 0x707   : > { %v1624_v26 = vpop.eup %1623 }
 0x708   : > { %v1191_v27 = vmul.f32 %v1624_v26, %v1189_v24  ;;  %vm1197_vm1 = vweird.f32 %v1624_v26  ;;  %v1602_v24 = vld [vmem:[%s2346_s17] ss:$0 sm:$0xff]  ;;  %s1369_s17 = sshll.u32 %s1365_s2, 4  ;;  %s1370_s17 = int_to_ptr.hbm [resolvable:$true] %s1369_s17 }
 0x709   : > { %vm1198_vm6 = vmor %vm1196_vm5, %vm1197_vm1  ;;  %s1763_s15 = sshra.s32 %s1370_s17, 4  ;;  %s1764_s15 = int_to_ptr.hbm [resolvable:$true] %s1763_s15 }
 0x70a   : > { %v1192_v28 = vmul.f32 %v1624_v26, %v1191_v27  ;;  %s1765_s16 = scalar_lea.hbm %s1764_s15, 8  ;;  %p1770_p7 = scmp.lt.s32.totalorder %s1764_s15, %s2349_s22 }
 0x70b   : > { %p1766_p1 = scmp.ne.s32.totalorder %s1764_s15, %s1765_s16  ;;  %p1771_p9 = scmp.lt.s32.totalorder %s1769_s8, %s1765_s16 }
 0x70c   : > { %v1193_v29 = vmul.f32 0.5, %v1192_v28 }
 0x70d   : > { %p1767_p3 = pnand %p1766_p1, %p2003_p4  ;;  %p1772_p5 = por %p1771_p9, %p1770_p7 }
 0x70e   : > { %v1194_v30 = vsub.f32 1.5, %v1193_v29 }
 0x70f   : > { %p1768_p12 = pneg %p1767_p3 }
 0x710   : > { %v1195_v31 = vmul.f32 %v1624_v26, %v1194_v30 }
 0x711   : > { %p1773_p8 = pnand %p1772_p5, %p1768_p12 }
 0x712   : > { %v1199_v33 = vsel %vm1198_vm6, %v1624_v26, %v1195_v31 }
 0x713   : > { %v1200_v34 = vmul.f32 %v1199_v33, %v1183_v15 }
 0x715   : > { %v1204_v25 = vmul.f32 %v1599_v32, %v1200_v34 }
 0x717   : > { %v2202_v36 = vadd.f32 %v1600_v35, %v1204_v25 }
 0x719   : > { %1509 = vmatmul.msk.f32.vlgmr.msrb.gmra.mxu2 %vm671_vm0, %v2202_v36 }
 0x79c   : > { %v1237_v38 = vpop.f32.mrf.mxu2 }
 0x79d   : > { %v1238_v39 = vadd.f32 %v1601_v37, %v1237_v38 }
 0x79f   : > { %v1241_v40 = vmul.f32 0.70710677, %v1238_v39  ;;  %v1240_v20 = vmul.f32 0.5, %v1238_v39 }
 0x7a1   : > { %v1242_v41 = vmul.f32 %v1241_v40, %v1241_v40 }
 0x7a3   : > { %v1243_v42 = vmin.f32 %v1242_v41, 16.0 }
 0x7a5   : > { %v1244_v43 = vmul.f32 2.1237322e-06, %v1243_v42  ;;  %v1255_v44 = vmul.f32 3.8918573e-05, %v1243_v42 }
 0x7a7   : > { %v1245_v46 = vadd.f32 0.00028619796, %v1244_v43  ;;  %v1256_v47 = vadd.f32 0.001143296, %v1255_v44  ;;  %v1604_v44 = vld [vmem:[%s2351_s18] ss:$0 sm:$0xff] }
 0x7a9   : > { %v1246_v49 = vmul.f32 %v1245_v46, %v1243_v42  ;;  %v1257_v50 = vmul.f32 %v1256_v47, %v1243_v42 }
 0x7ab   : > { %v1258_v52 = vadd.f32 0.014752088, %v1257_v50  ;;  %v1247_v54 = vadd.f32 0.0036580483, %v1246_v49 }
 0x7ad   : > { %v1259_v55 = vmul.f32 %v1258_v52, %v1243_v42  ;;  %v1248_v59 = vmul.f32 %v1247_v54, %v1243_v42 }
 0x7af   : > { %v1260_v57 = vadd.f32 0.112945676, %v1259_v55  ;;  %v1249_v63 = vadd.f32 0.05243302, %v1248_v59 }
 0x7b1   : > { %v1261_v61 = vmul.f32 %v1260_v57, %v1243_v42  ;;  %v1250_v2 = vmul.f32 %v1249_v63, %v1243_v42 }
 0x7b3   : > { %v1262_v62 = vadd.f32 0.4994258, %v1261_v61  ;;  %v1251_v3 = vadd.f32 0.18741608, %v1250_v2 }
 0x7b5   : > { %v1263_v0 = vmul.f32 %v1262_v62, %v1243_v42  ;;  %v1252_v5 = vmul.f32 %v1251_v3, %v1243_v42 }
 0x7b7   : > { %v1264_v1 = vadd.f32 1.0, %v1263_v0  ;;  %v1253_v9 = vadd.f32 1.1283791, %v1252_v5 }
 0x7b9   : > { %1625 = vrcp.f32 %v1264_v1  ;;  %v1276_v8 = vand.u32 2147483648, %v1264_v1  ;;  %v1274_v13 = vand.u32 2147483647, %v1264_v1  ;;  %vm1270_vm8 = vweird.f32 %v1264_v1 }
 0x7ba   : > { %v1254_v16 = vmul.f32 %v1253_v9, %v1241_v40 }
 0x7bb   : > { %v1277_v15 = vor.u32 1.1754944e-38, %v1276_v8  ;;  %vm1275_vm10 = vcmp.eq.f32.partialorder %v1274_v13, 8.507059e+37 }
 0x7bf   : > { %v1626_v4 = vpop.eup %1625 }
 0x7c0   : > { %v1266_v6 = vmul.f32 %v1626_v4, %v1264_v1  ;;  %vm1271_vm7 = vweird.f32 %v1626_v4 }
 0x7c1   : > { %vm1272_vm9 = vmor %vm1270_vm8, %vm1271_vm7 }
 0x7c2   : > { %v1267_v7 = vsub.f32 1.0, %v1266_v6 }
 0x7c4   : > { %v1268_v11 = vmul.f32 %v1626_v4, %v1267_v7 }
 0x7c6   : > { %v1269_v14 = vadd.f32 %v1626_v4, %v1268_v11 }
 0x7c8   : > { %v1273_v10 = vsel %vm1272_vm9, %v1626_v4, %v1269_v14 }
 0x7c9   : > { %v1278_v17 = vsel %vm1275_vm10, %v1277_v15, %v1273_v10 }
 0x7ca   : > { %v1279_v18 = vmul.f32 %v1278_v17, %v1254_v16 }
 0x7cc   : > { %v1510_v19 = vclamps-f32 %v1279_v18, 1.0 }
 0x7ce   : > { %v1282_v21 = vadd.f32 1.0, %v1510_v19 }
 0x7d0   : > { %v1283_v23 = vmul.f32 %v1282_v21, %v1240_v20 }
 0x7d2   : > { %1511 = vmatmul.msk.f32.vlgmr.msrb.gmra.mxu3 %vm1296_vm11, %v1283_v23 }
 0x855   : > { %v1317_v26 = vpop.f32.mrf.mxu3 }
 0x856   : > { %v1318_v27 = vadd.f32 %v1602_v24, %v1317_v26 }
 0x858   : > { %v1320_v28 = vadd.f32 %v1318_v27, %v2202_v36 }
 0x85a   : > { %v1323_v29 = vsel %vm671_vm0, %v1320_v28, 0.0 }
 0x85b   : > { %1324 = vadd.xlane.f32.xlu0 %v1323_v29 }
 0x8ce   : > { %v1325_v30 = vpop.xlane.xlu0 %1324 }
 0x8cf   : > { %v1326_v31 = vmul.f32 %v1325_v30, %v2191_v12 }
 0x8d1   : > { %v1327_v32 = vsub.f32 %v1320_v28, %v1326_v31 }
 0x8d3   : > { %v1328_v33 = vmul.f32 %v1327_v32, %v1327_v32 }
 0x8d5   : > { %v1329_v34 = vsel %vm671_vm0, %v1328_v33, 0.0 }
 0x8d6   : > { %1330 = vadd.xlane.f32.xlu2 %v1329_v34 }
 0x949   : > { %v1331_v35 = vpop.xlane.xlu2 %1330 }
 0x94a   : > { %v1332_v25 = vmul.f32 %v1331_v35, %v2191_v12 }
 0x94c   : > { %v1333_v37 = vadd.f32 1e-12, %v1332_v25 }
 0x94e   : > { %1627 = vrsqrt.f32 %v1333_v37  ;;  %vm1340_vm13 = vweird.f32 %v1333_v37 }
 0x954   : > { %v1628_v38 = vpop.eup %1627 }
 0x955   : > { %v1335_v36 = vmul.f32 %v1628_v38, %v1333_v37  ;;  %vm1341_vm12 = vweird.f32 %v1628_v38 }
 0x956   : > { %vm1342_vm14 = vmor %vm1340_vm13, %vm1341_vm12 }
 0x957   : > { %v1336_v39 = vmul.f32 %v1628_v38, %v1335_v36 }
 0x959   : > { %v1337_v40 = vmul.f32 0.5, %v1336_v39 }
 0x95b   : > { %v1338_v41 = vsub.f32 1.5, %v1337_v40 }
 0x95d   : > { %v1339_v42 = vmul.f32 %v1628_v38, %v1338_v41 }
 0x95f   : > { %v1343_v12 = vsel %vm1342_vm14, %v1628_v38, %v1339_v42 }
 0x960   : > { %v1344_v43 = vmul.f32 %v1343_v12, %v1327_v32 }
 0x962   : > { %v1348_v45 = vmul.f32 %v1603_v22, %v1344_v43 }
 0x964   : > { %v1352_v46 = vadd.f32 %v1604_v44, %v1348_v45 }
 0x966   : > { %1353 = vst.msk [vmem:[%s660_s20] sm:$0xff] %vm671_vm0, %v1352_v46 }
 0x967   : > { %1776 = shalt.err (!%p1773_p8)
}
 0x968   : > { %1528 = dma.vmem_to_hbm [thread:$0]  (%p2003_p4), %s1368_s24, 128, %s1370_s17, %s1355_s21  }
 0x969 PF: > { %s2352_s13 = sld [smem:[#allocation16_spill]]  ;;  %p2354_p10 = scmp.ge.s32.totalorder %s1827_s30, 2 }
 0x96b   : > { %p1545_p13 = pnand %p2354_p10, %p2007_p6 }
 0x96d   : > { %p1546_p11 = pneg %p1545_p13 }
 0x96f   : > { %s1381_s12 = sand.u32 1, %s2352_s13  }
 0x970   : > { %s1382_s11 = scalar_lea.sflag [#allocation4], %s1381_s12 }
 0x971   : > { %1810 = dma.done.wait (%p1546_p11), %s1382_s11, 128  }
 0x972   : > { %1812 = vsyncadd (%p1546_p11), %s1382_s11, 4294967168  ;;  %s2355_s30 = sld [smem:[#allocation18_spill]]  ;;  %s2358_s27 = smov %s1819_s28 }
 0x973   : > { %s2356_s18 = sld [smem:[#allocation17_spill]] }
 0x974   : > { %s2357_s29 = sld [smem:[#allocation19_spill]] }
 0x978   : > { %p35_p0 = scmp.ge.s32.totalorder %s2355_s30, 4  }
 0x979   : > { %s2359_s28 = smov %s2356_s18 }
 0x97a   :  { %37 = sbr.rel (!%p35_p0) target bundleno = 21 (0x15), region = 158 }
 0x97f   :  { %1388 = vsyncpa [#allocation3], 1 }
 0x980   :  { %1390 = vsyncpa [#allocation3 + $0x1], 1 }
 0x981   :  { %1391 = vsyncpa [#allocation6], 1 }
 0x982   :  { %1393 = vsyncpa [#allocation6 + $0x1], 1 }
 0x983   :  { %1394 = vsyncpa [#allocation9], 1 }
 0x984   :  { %1395 = vsyncpa [#allocation4], 1 }
 0x985   :  { %1397 = vsyncpa [#allocation4 + $0x1], 1 }

</bundles_post_ra>
